<compile_context>
chip_gen: v5e
topology: v5e:2x2
jax: 0.10.0
libtpu: 0.0.40
codegen_flags: <defaults>
</compile_context>

<pallas_src>
import functools

import jax
import jax.numpy as jnp
from jax.experimental import pallas as pl
from jax.experimental.pallas import tpu as pltpu


def _round_up(x, m):
    return (x + m - 1) // m * m


def _focal_loss_kernel(*refs, gamma, reduction, n, tile, class_axis,
                       use_alpha_vec, alpha_scalar):
    """Per-tile focal loss.

    Lane-dense layout (class_axis=0, C < 128):
        logits (C, T), targets/alpha (1, T), per-sample vectors (1, T).
    Natural layout (class_axis=1, C >= 128):
        logits (T, C), targets/alpha (T, 1), per-sample vectors (T, 1).
    mean/sum : out = (1, 128) per-core partial sum, acc = per-sample-vector
               shaped f32 scratch (resident across the 'arbitrary' grid axis).
    'none'   : out = per-sample vector tile.
    """
    is_reduce = reduction in ("mean", "sum")
    refs = list(refs)
    logits_ref = refs.pop(0)
    targets_ref = refs.pop(0)
    alpha_ref = refs.pop(0) if use_alpha_vec else None
    out_ref = refs.pop(0)
    acc_ref = refs.pop(0) if is_reduce else None

    c_ax = class_axis
    s_ax = 1 - class_axis

    logits = logits_ref[...].astype(jnp.float32)
    tgt = targets_ref[...]                              # int32

    # --- numerically stable log-sum-exp over the class axis ---
    m = jnp.max(logits, axis=c_ax, keepdims=True)
    e = jnp.exp(logits - m)
    sumexp = jnp.sum(e, axis=c_ax, keepdims=True)
    lse = jnp.log(sumexp) + m

    # --- one-hot select of the target class (its logit and its exp) ---
    cls = jax.lax.broadcasted_iota(jnp.int32, logits.shape, c_ax)
    onehot = cls == tgt
    logit_t = jnp.sum(jnp.where(onehot, logits, 0.0), axis=c_ax, keepdims=True)
    e_t = jnp.sum(jnp.where(onehot, e, 0.0), axis=c_ax, keepdims=True)

    ce = lse - logit_t                  # per-sample cross entropy
    pt = e_t / sumexp                   # == exp(-ce); reuses e -> one fewer EUP exp
    om = jnp.clip(1.0 - pt, 0.0, 1.0)   # clamp: ce can round slightly negative

    g = float(gamma)
    if g.is_integer() and 0.0 <= g <= 8.0:
        # integer gamma (default 2.0): repeated multiply, no pow/EUP chain
        w = jnp.ones_like(om)
        for _ in range(int(g)):
            w = w * om
    else:
        w = om ** g
    focal = w * ce

    if use_alpha_vec:
        focal = alpha_ref[...].astype(jnp.float32) * focal
    elif alpha_scalar is not None:
        focal = float(alpha_scalar) * focal

    if is_reduce:
        i = pl.program_id(0)
        j = pl.program_id(1)
        nj = pl.num_programs(1)
        gt = i * nj + j                 # global tile id (unclamped -> phantom tiles mask to 0)
        pos = gt * tile + jax.lax.broadcasted_iota(jnp.int32, focal.shape, s_ax)
        focal = jnp.where(pos < n, focal, 0.0)

        @pl.when(j == 0)
        def _init():
            acc_ref[...] = jnp.zeros_like(acc_ref)

        # lane/sublane-wise accumulation only; single cross-lane reduce below
        acc_ref[...] += focal

        @pl.when(j == nj - 1)
        def _finalize():
            total = jnp.sum(acc_ref[...], keepdims=True)        # (1, 1)
            out_ref[...] = jnp.broadcast_to(total, out_ref.shape)
    else:
        out_ref[...] = focal.astype(out_ref.dtype)


def focal_loss(inputs, targets, *, gamma=2.0, alpha=None, reduction="mean",
               _tile_hint=None):
    """JAX/Pallas equivalent of FocalLoss.forward(inputs, targets).

    inputs : (N, C) logits (f32 or bf16 -- bf16 halves the dominant HBM stream)
    targets: (N,)   integer class indices
    """
    n, c = inputs.shape
    itemsize = jnp.dtype(inputs.dtype).itemsize
    targets = targets.astype(jnp.int32)

    use_alpha_vec = alpha is not None and not isinstance(alpha, (float, int))
    alpha_scalar = float(alpha) if isinstance(alpha, (float, int)) else None
    is_reduce = reduction in ("mean", "sum")

    # Layout choice (see header comment): lane-dense for small C, natural
    # (no transpose, no extra HBM pass) for C >= 128.
    lane_dense = c < 128

    # ---- tile sizing from an explicit, v7x-safe VMEM budget ----
    TILE_BUDGET = 20 * 1024 * 1024
    if lane_dense:
        sub_in = _round_up(c, 8 * 4 // itemsize)        # input-dtype sublane padding
        per_sample = (2 * (sub_in * itemsize + 8 * 4)              # logits+targets, dbl-buf
                      + (2 * 8 * 4 if use_alpha_vec else 0)        # alpha, dbl-buf
                      + 6 * _round_up(c, 8) * 4                    # in-kernel f32 temporaries
                      + 8 * 8 * 4)                                 # per-sample vectors/acc/out
        tile = TILE_BUDGET // per_sample
        tile = max(128, min(tile // 128 * 128, 128 * 1024))
        tile = min(tile, _round_up(n, 128))
        align = 128
    else:
        lanes_in = _round_up(c, 128)                    # lane padding of a (T, C) tile
        per_sample = (2 * (lanes_in * itemsize + 128 * 4)
                      + (2 * 128 * 4 if use_alpha_vec else 0)
                      + 6 * lanes_in * 4
                      + 8 * 128 * 4)
        tile = TILE_BUDGET // per_sample
        tile = max(8, min(tile // 8 * 8, 8 * 1024))
        tile = min(tile, _round_up(n, 8))
        align = 8
    if _tile_hint is not None:                          # test hook
        tile = _round_up(int(_tile_hint), align)

    n_tiles = pl.cdiv(n, tile)

    # ---- operands (no batch padding: partial last block + in-kernel mask) ----
    if lane_dense:
        logits_op = inputs.T                            # (C, N); single fused XLA transpose
        targets_op = targets.reshape(1, n)
        class_axis = 0
        vec_block = (1, tile)
        logits_block = (c, tile)
    else:
        logits_op = inputs                              # (N, C); streamed as-is
        targets_op = targets.reshape(n, 1)
        class_axis = 1
        vec_block = (tile, 1)
        logits_block = (tile, c)

    operands = [logits_op, targets_op]
    if use_alpha_vec:
        alpha_g = jnp.asarray(alpha, jnp.float32)[targets]   # tiny gather in wrapper
        operands.append(alpha_g.reshape(targets_op.shape))

    kernel = functools.partial(
        _focal_loss_kernel, gamma=float(gamma), reduction=reduction,
        n=n, tile=tile, class_axis=class_axis,
        use_alpha_vec=use_alpha_vec, alpha_scalar=alpha_scalar)

    if is_reduce:
        # 2-way "parallel" split so both v7x TensorCores own a resident partial.
        nsplit = 2 if n_tiles >= 2 else 1
        nj = pl.cdiv(n_tiles, nsplit)

        def tmap(i, j):     # clamp phantom tiles (odd n_tiles); kernel masks them to 0
            return jnp.minimum(i * nj + j, n_tiles - 1)

        if lane_dense:
            def in_map(i, j):
                return (0, tmap(i, j))
        else:
            def in_map(i, j):
                return (tmap(i, j), 0)

        in_specs = [pl.BlockSpec(logits_block, in_map),
                    pl.BlockSpec(vec_block, in_map)]
        if use_alpha_vec:
            in_specs.append(pl.BlockSpec(vec_block, in_map))

        grid = (nsplit, nj)
        out_shape = jax.ShapeDtypeStruct((1, 128 * nsplit), jnp.float32)
        out_specs = pl.BlockSpec((1, 128), lambda i, j: (0, i))
        scratch_shapes = [pltpu.VMEM(vec_block, jnp.float32)]
        dim_sem = ("parallel", "arbitrary")
        out_bytes = 128 * nsplit * 4
    else:
        if lane_dense:
            def in_map(t):
                return (0, t)
            out_shape = jax.ShapeDtypeStruct((1, n_tiles * tile), jnp.float32)
        else:
            def in_map(t):
                return (t, 0)
            out_shape = jax.ShapeDtypeStruct((n_tiles * tile, 1), jnp.float32)
        in_specs = [pl.BlockSpec(logits_block, in_map),
                    pl.BlockSpec(vec_block, in_map)]
        if use_alpha_vec:
            in_specs.append(pl.BlockSpec(vec_block, in_map))
        grid = (n_tiles,)
        out_specs = pl.BlockSpec(vec_block, in_map)
        scratch_shapes = []
        dim_sem = ("parallel",)
        out_bytes = n_tiles * tile * 4

    # ---- explicit VMEM accounting + headroom (cap well under v7x's 64 MiB) ----
    vmem_est = per_sample * tile
    vmem_limit = int(min(48 * 2**20, max(32 * 2**20, vmem_est + 16 * 2**20)))

    hbm_in = n * c * itemsize + n * 4 + (n * 4 if use_alpha_vec else 0)
    cost = pl.CostEstimate(flops=n * (6 * c + 14),
                           transcendentals=n * (c + 2),
                           bytes_accessed=hbm_in + out_bytes)

    result = pl.pallas_call(
        kernel,
        grid=grid,
        out_shape=out_shape,
        in_specs=in_specs,
        out_specs=out_specs,
        scratch_shapes=scratch_shapes,
        compiler_params=pltpu.CompilerParams(
            dimension_semantics=dim_sem,
            vmem_limit_bytes=vmem_limit),
        cost_estimate=cost,
    )(*operands)

    if is_reduce:
        total = result[0, 0]
        if nsplit == 2:
            total = total + result[0, 128]
        return total / n if reduction == "mean" else total
    return result[0, :n] if lane_dense else result[:n, 0]


def _focal_loss_ref(inputs, targets, *, gamma=2.0, alpha=None, reduction="mean"):
    """Pure-JAX reference for correctness checking."""
    logp = jax.nn.log_softmax(inputs.astype(jnp.float32), axis=-1)
    ce = -jnp.take_along_axis(logp, targets[:, None].astype(jnp.int32), axis=-1)[:, 0]
    pt = jnp.exp(-ce)
    focal = (1.0 - pt) ** gamma * ce
    if alpha is not None:
        if isinstance(alpha, (float, int)):
            focal = alpha * focal
        else:
            focal = jnp.asarray(alpha, jnp.float32)[targets] * focal
    if reduction == "mean":
        return focal.mean()
    if reduction == "sum":
        return focal.sum()
    return focal


if __name__ == "__main__":
    key = jax.random.PRNGKey(0)
    k1, k2, k3, k4 = jax.random.split(key, 4)

    def check(name, got, want, tol=1e-5):
        got = jax.block_until_ready(got)
        assert jnp.allclose(got, want, rtol=tol, atol=tol), (name, got, want)

    # Small shapes matching the module's use (topological material classes).
    N, C = 8, 4
    logits = jax.random.normal(k1, (N, C), dtype=jnp.float32) * 2.0
    targets = jax.random.randint(k2, (N,), 0, C, dtype=jnp.int32)

    # default config: alpha=None, gamma=2.0, reduction='mean'
    check("mean", focal_loss(logits, targets), _focal_loss_ref(logits, targets))

    # per-class alpha weights (alpha.gather(0, targets) path)
    alpha = jnp.array([0.25, 0.75, 1.0, 0.5], dtype=jnp.float32)
    check("alpha-vec", focal_loss(logits, targets, alpha=alpha),
          _focal_loss_ref(logits, targets, alpha=alpha))

    # reduction='none'
    check("none", focal_loss(logits, targets, reduction="none"),
          _focal_loss_ref(logits, targets, reduction="none"))

    # reduction='sum', scalar alpha (constant-fold path), non-integer gamma
    check("sum", focal_loss(logits, targets, gamma=1.5, alpha=0.25, reduction="sum"),
          _focal_loss_ref(logits, targets, gamma=1.5, alpha=0.25, reduction="sum"))

    # bf16 logits (halves the dominant HBM stream; math stays f32 in-register)
    logits_bf16 = logits.astype(jnp.bfloat16)
    check("bf16-mean", focal_loss(logits_bf16, targets),
          _focal_loss_ref(logits_bf16, targets))

    # Multi-tile mean / none: odd tile count -> exercises the 2-way core split,
    # the clamped phantom tile, and the unpadded partial last block.
    N2 = 600
    k5, k6 = jax.random.split(k3)
    logits2 = jax.random.normal(k5, (N2, C), dtype=jnp.float32)
    targets2 = jax.random.randint(k6, (N2,), 0, C, dtype=jnp.int32)
    check("mean-multitile", focal_loss(logits2, targets2, _tile_hint=128),
          _focal_loss_ref(logits2, targets2))
    check("none-multitile",
          focal_loss(logits2, targets2, reduction="none", _tile_hint=128),
          _focal_loss_ref(logits2, targets2, reduction="none"))

    # Large-C natural-layout path (no wrapper transpose, classes on lanes).
    N3, C3 = 64, 256
    k7, k8 = jax.random.split(k4)
    logits3 = jax.random.normal(k7, (N3, C3), dtype=jnp.float32)
    targets3 = jax.random.randint(k8, (N3,), 0, C3, dtype=jnp.int32)
    check("largeC-mean", focal_loss(logits3, targets3),
          _focal_loss_ref(logits3, targets3))
    check("largeC-none", focal_loss(logits3, targets3, reduction="none"),
          _focal_loss_ref(logits3, targets3, reduction="none"))

    print("KERNEL_OK")
</pallas_src>

<mosaic_0001>
module attributes {stable_mosaic.version = 11 : i64} {
  func.func @_focal_loss_kernel(%arg0: i32, %arg1: i32, %arg2: memref<4x128xf32, #tpu.memory_space<vmem>>, %arg3: memref<1x128xi32, #tpu.memory_space<vmem>>, %arg4: memref<1x128xf32, #tpu.memory_space<vmem>>, %arg5: memref<1x128xf32, #tpu.memory_space<vmem>>) attributes {dimension_semantics = [#tpu.dimension_semantics<parallel>, #tpu.dimension_semantics<arbitrary>], iteration_bounds = array<i64: 1, 1>, scalar_prefetch = 0 : i64, scratch_operands = 1 : i64, tpu.core_type = #tpu.core_type<tc>, window_params = [{transform_indices = @transform_0, window_bounds = array<i64: 4, 128>}, {transform_indices = @transform_1, window_bounds = array<i64: 1, 128>}, {transform_indices = @transform_2, window_bounds = array<i64: 1, 128>}]} {
    %c0 = arith.constant 0 : index
    %c0_0 = arith.constant 0 : index
    %0 = vector.load %arg2[%c0, %c0_0] : memref<4x128xf32, #tpu.memory_space<vmem>>, vector<4x128xf32>
    %c0_1 = arith.constant 0 : index
    %c0_2 = arith.constant 0 : index
    %1 = vector.load %arg3[%c0_1, %c0_2] : memref<1x128xi32, #tpu.memory_space<vmem>>, vector<1x128xi32>
    %cst = arith.constant dense<0xFF800000> : vector<128xf32>
    %2 = vector.multi_reduction <maximumf>, %0, %cst [0] : vector<4x128xf32> to vector<128xf32>
    %3 = vector.shape_cast %2 : vector<128xf32> to vector<1x128xf32>
    %4 = vector.broadcast %3 : vector<1x128xf32> to vector<4x128xf32>
    %5 = arith.subf %0, %4 : vector<4x128xf32>
    %6 = math.exp %5 : vector<4x128xf32>
    %cst_3 = arith.constant dense<0.000000e+00> : vector<128xf32>
    %7 = vector.multi_reduction <add>, %6, %cst_3 [0] : vector<4x128xf32> to vector<128xf32>
    %8 = vector.shape_cast %7 : vector<128xf32> to vector<1x128xf32>
    %9 = math.log %8 : vector<1x128xf32>
    %10 = arith.addf %9, %3 : vector<1x128xf32>
    %11 = tpu.iota {dimensions = array<i32: 0>} : vector<4x128xi32>
    %12 = vector.broadcast %1 : vector<1x128xi32> to vector<4x128xi32>
    %13 = arith.cmpi eq, %11, %12 : vector<4x128xi32>
    %cst_4 = arith.constant 0.000000e+00 : f32
    %14 = vector.broadcast %cst_4 : f32 to vector<4x128xf32>
    %15 = arith.select %13, %0, %14 : vector<4x128xi1>, vector<4x128xf32>
    %cst_5 = arith.constant dense<0.000000e+00> : vector<128xf32>
    %16 = vector.multi_reduction <add>, %15, %cst_5 [0] : vector<4x128xf32> to vector<128xf32>
    %17 = vector.shape_cast %16 : vector<128xf32> to vector<1x128xf32>
    %cst_6 = arith.constant 0.000000e+00 : f32
    %18 = vector.broadcast %cst_6 : f32 to vector<4x128xf32>
    %19 = arith.select %13, %6, %18 : vector<4x128xi1>, vector<4x128xf32>
    %cst_7 = arith.constant dense<0.000000e+00> : vector<128xf32>
    %20 = vector.multi_reduction <add>, %19, %cst_7 [0] : vector<4x128xf32> to vector<128xf32>
    %21 = vector.shape_cast %20 : vector<128xf32> to vector<1x128xf32>
    %22 = arith.subf %10, %17 : vector<1x128xf32>
    %23 = arith.divf %21, %8 : vector<1x128xf32>
    %cst_8 = arith.constant 1.000000e+00 : f32
    %24 = vector.broadcast %cst_8 : f32 to vector<1x128xf32>
    %25 = arith.subf %24, %23 : vector<1x128xf32>
    %cst_9 = arith.constant 0.000000e+00 : f32
    %cst_10 = arith.constant 1.000000e+00 : f32
    %26 = vector.broadcast %cst_9 : f32 to vector<1x128xf32>
    %27 = arith.maximumf %26, %25 : vector<1x128xf32>
    %28 = vector.broadcast %cst_10 : f32 to vector<1x128xf32>
    %29 = arith.minimumf %28, %27 : vector<1x128xf32>
    %cst_11 = arith.constant 1.000000e+00 : f32
    %30 = vector.broadcast %cst_11 : f32 to vector<1x128xf32>
    %31 = arith.mulf %30, %29 : vector<1x128xf32>
    %32 = arith.mulf %31, %29 : vector<1x128xf32>
    %33 = arith.mulf %32, %22 : vector<1x128xf32>
    %c1_i32 = arith.constant 1 : i32
    %34 = arith.muli %arg0, %c1_i32 : i32
    %35 = arith.addi %34, %arg1 : i32
    %c128_i32 = arith.constant 128 : i32
    %36 = arith.muli %35, %c128_i32 : i32
    %37 = tpu.iota {dimensions = array<i32: 1>} : vector<1x128xi32>
    %38 = vector.broadcast %36 : i32 to vector<1x128xi32>
    %39 = arith.addi %38, %37 : vector<1x128xi32>
    %c8_i32 = arith.constant 8 : i32
    %40 = vector.broadcast %c8_i32 : i32 to vector<1x128xi32>
    %41 = arith.cmpi slt, %39, %40 : vector<1x128xi32>
    %cst_12 = arith.constant 0.000000e+00 : f32
    %42 = vector.broadcast %cst_12 : f32 to vector<1x128xf32>
    %43 = arith.select %41, %33, %42 : vector<1x128xi1>, vector<1x128xf32>
    %c0_i32 = arith.constant 0 : i32
    %44 = arith.cmpi eq, %arg1, %c0_i32 : i32
    %45 = arith.extui %44 : i1 to i32
    %c0_i32_13 = arith.constant 0 : i32
    %46 = arith.cmpi ne, %45, %c0_i32_13 : i32
    scf.if %46 {
      %cst_20 = arith.constant 0.000000e+00 : f32
      %53 = vector.broadcast %cst_20 : f32 to vector<1x128xf32>
      %c0_21 = arith.constant 0 : index
      %c0_22 = arith.constant 0 : index
      %54 = vector.load %arg5[%c0_21, %c0_22] : memref<1x128xf32, #tpu.memory_space<vmem>>, vector<1x128xf32>
      tpu.vector_store %arg5[%c0_21, %c0_22], %53 {strides = array<i32>} : memref<1x128xf32, #tpu.memory_space<vmem>>, vector<1x128xf32>,
    } else {
    }
    %c0_14 = arith.constant 0 : index
    %c0_15 = arith.constant 0 : index
    %47 = vector.load %arg5[%c0_14, %c0_15] : memref<1x128xf32, #tpu.memory_space<vmem>>, vector<1x128xf32>
    %48 = arith.addf %47, %43 : vector<1x128xf32>
    %c0_16 = arith.constant 0 : index
    %c0_17 = arith.constant 0 : index
    %49 = vector.load %arg5[%c0_16, %c0_17] : memref<1x128xf32, #tpu.memory_space<vmem>>, vector<1x128xf32>
    tpu.vector_store %arg5[%c0_16, %c0_17], %48 {strides = array<i32>} : memref<1x128xf32, #tpu.memory_space<vmem>>, vector<1x128xf32>,
    %c0_i32_18 = arith.constant 0 : i32
    %50 = arith.cmpi eq, %arg1, %c0_i32_18 : i32
    %51 = arith.extui %50 : i1 to i32
    %c0_i32_19 = arith.constant 0 : i32
    %52 = arith.cmpi ne, %51, %c0_i32_19 : i32
    scf.if %52 {
      %c0_20 = arith.constant 0 : index
      %c0_21 = arith.constant 0 : index
      %53 = vector.load %arg5[%c0_20, %c0_21] : memref<1x128xf32, #tpu.memory_space<vmem>>, vector<1x128xf32>
      %54 = vector.shape_cast %53 : vector<1x128xf32> to vector<1x1x128xf32>
      %cst_22 = arith.constant dense<0.000000e+00> : vector<1xf32>
      %55 = vector.multi_reduction <add>, %54, %cst_22 [1, 2] : vector<1x1x128xf32> to vector<1xf32>
      %56 = vector.shape_cast %55 : vector<1xf32> to vector<1x1x1xf32>
      %57 = vector.extract %56[0, 0, 0] : f32 from vector<1x1x1xf32>
      %58 = vector.broadcast %57 : f32 to vector<1x1xf32>
      %59 = vector.shape_cast %58 : vector<1x1xf32> to vector<1x1xf32>
      %60 = vector.broadcast %59 : vector<1x1xf32> to vector<1x128xf32>
      %c0_23 = arith.constant 0 : index
      %c0_24 = arith.constant 0 : index
      %61 = vector.load %arg4[%c0_23, %c0_24] : memref<1x128xf32, #tpu.memory_space<vmem>>, vector<1x128xf32>
      tpu.vector_store %arg4[%c0_23, %c0_24], %60 {strides = array<i32>} : memref<1x128xf32, #tpu.memory_space<vmem>>, vector<1x128xf32>,
    } else {
    }
    return
  }
  func.func @transform_0(%arg0: i32, %arg1: i32) -> (i32, i32) {
    %c1_i32 = arith.constant 1 : i32
    %0 = arith.muli %arg0, %c1_i32 : i32
    %1 = arith.addi %0, %arg1 : i32
    %c0_i32 = arith.constant 0 : i32
    %2 = arith.minsi %1, %c0_i32 : i32
    %c0_i32_0 = arith.constant 0 : i32
    %c0_i32_1 = arith.constant 0 : i32
    return %c0_i32_0, %2 : i32, i32
  }
  func.func @transform_1(%arg0: i32, %arg1: i32) -> (i32, i32) {
    %c1_i32 = arith.constant 1 : i32
    %0 = arith.muli %arg0, %c1_i32 : i32
    %1 = arith.addi %0, %arg1 : i32
    %c0_i32 = arith.constant 0 : i32
    %2 = arith.minsi %1, %c0_i32 : i32
    %c0_i32_0 = arith.constant 0 : i32
    %c0_i32_1 = arith.constant 0 : i32
    return %c0_i32_0, %2 : i32, i32
  }
  func.func @transform_2(%arg0: i32, %arg1: i32) -> (i32, i32) {
    %c0_i32 = arith.constant 0 : i32
    %c0_i32_0 = arith.constant 0 : i32
    return %c0_i32, %arg0 : i32, i32
  }
}

</mosaic_0001>

<bundles_post_ra>
// kernel: tpu_custom_call.1
= control target key start
LH: loop header
LB: loop body
LE: loop exit
PB: predicated region body
PF: predicated region fallthrough
CT: control target
= control target key end

     0   :  { %7 = vsyncpa [#allocation4], 0  ;;  %s296_s0 = inlined_call_operand.hbm [shape: f32[4,8], index: 0, kind: input, shape index: {}]   ;;  %s297_s1 = inlined_call_operand.hbm [shape: s32[1,8], index: 1, kind: input, shape index: {}]   ;;  %s298_s2 = inlined_call_operand.hbm [shape: f32[1,128], index: 2, kind: output, shape index: {}]  }
   0x1   :  { %8 = vsyncpa [#allocation7], 0 }
   0x2   :  { %9 = vsyncpa [#allocation5], 0  ;;  %s20_s11 = sshll.u32 %s296_s0, 4  ;;  %s264_s12 = smov [#allocation3]   ;;  %s21_s11 = int_to_ptr.hbm [resolvable:$true] %s20_s11 }
   0x3   :  { %s22_s13 = sshll.u32 %s264_s12, 4  ;;  %s35_s16 = sshll.u32 %s297_s1, 4  ;;  %s23_s13 = int_to_ptr.vmem [resolvable:$true] %s22_s13  ;;  %s36_s16 = int_to_ptr.hbm [resolvable:$true] %s35_s16 }
   0x4   :  { %25 = dma.hbm_to_vmem [thread:$0]  %s21_s11, 64, %s23_s13, [#allocation4]  }
   0x5   :  { %s265_s17 = smov [#allocation6]  }
   0x6   :  { %s37_s18 = sshll.u32 %s265_s17, 4  ;;  %s38_s18 = int_to_ptr.vmem [resolvable:$true] %s37_s18 }
   0x7   :  { %40 = dma.hbm_to_vmem [thread:$0]  %s36_s16, 16, %s38_s18, [#allocation7]  }
   0x8   :  { %258 = dma.done.wait [#allocation4], 64  }
   0x9   :  { %259 = vsyncadd [#allocation4], 4294967232 }
   0xa   :  { %260 = dma.done.wait [#allocation7], 16  }
   0xb   :  { %261 = vsyncadd [#allocation7], 4294967280  ;;  %vm57_vm0 = vcmask 1043456   ;;  %v55_v0 = vld [vmem:[#allocation3] sm:$0xf]  ;;  %v78_v9 = vlaneseq  ;;  %v266_v19 = vmov 0.0  }
   0xc   :  { %v58_v1 = vsel %vm57_vm0, %v55_v0, -inf  ;;  %v179_v12 = vld [vmem:[#allocation6] ss:$0 sm:$0xff]  ;;  %131 = vst [vmem:[#allocation2] sm:$0x1] %v266_v19  ;;  %vm139_vm7 = vcmask 1040384  }
   0xd   :  { %v59_v2 = vrot.slane %v58_v1, 4  ;;  %v79_v11 = vshrl.u32 %v78_v9, 7  ;;  %v122_v54 = vand.u32 127, %v78_v9  ;;  %s267_s0 = smov [#allocation8]   ;;  %s159_s21 = sshll.u32 %s298_s2, 4  ;;  %s160_s21 = int_to_ptr.hbm [resolvable:$true] %s159_s21 }
   0xe   :  { %s157_s1 = sshll.u32 %s267_s0, 4  ;;  %s158_s1 = int_to_ptr.vmem [resolvable:$true] %s157_s1 }
   0xf   :  { %v60_v3 = vmax.f32 %v58_v1, %v59_v2  ;;  %vm81_vm1 = vcmp.eq.s32.totalorder %v79_v11, %v179_v12  ;;  %vm125_vm6 = vcmp.lt.s32.totalorder %v122_v54, 8 }
  0x10   :  { %v82_v23 = vsel %vm81_vm1, %v55_v0, 0.0 }
  0x11   :  { %v61_v4 = vrot.slane %v60_v3, 2  ;;  %v83_v25 = vsel %vm57_vm0, %v82_v23, 0.0 }
  0x12   :  { %v84_v28 = vrot.slane %v83_v25, 4 }
  0x13   :  { %v62_v5 = vmax.f32 %v60_v3, %v61_v4  ;;  %v132_v59 = vld [vmem:[#allocation2] sm:$0x1] }
  0x14   :  { %v85_v30 = vadd.f32 %v84_v28, %v83_v25 }
  0x15   :  { %v63_v6 = vrot.slane %v62_v5, 1 }
  0x16   :  { %v86_v33 = vrot.slane %v85_v30, 2 }
  0x17   :  { %v64_v7 = vmax.f32 %v62_v5, %v63_v6 }
  0x18   :  { %v87_v39 = vadd.f32 %v86_v33, %v85_v30 }
  0x19   :  { %v65_v8 = vsub.f32 %v55_v0, %v64_v7 }
  0x1a   :  { %v88_v46 = vrot.slane %v87_v39, 1 }
  0x1b   :  { %v66_v10 = vmul.f32 1.442695, %v65_v8 }
  0x1c   :  { %v89_v51 = vadd.f32 %v88_v46, %v87_v39 }
  0x1d   :  { %180 = vpow2.f32 %v66_v10 }
  0x23   :  { %v181_v13 = vpop.eup %180 }
  0x24   :  { %v68_v14 = vsel %vm57_vm0, %v181_v13, 0.0  ;;  %v90_v15 = vsel %vm81_vm1, %v181_v13, 0.0 }
  0x25   :  { %v69_v16 = vrot.slane %v68_v14, 4  ;;  %v91_v18 = vsel %vm57_vm0, %v90_v15, 0.0 }
  0x26   :  { %v92_v21 = vrot.slane %v91_v18, 4 }
  0x27   :  { %v70_v17 = vadd.f32 %v69_v16, %v68_v14 }
  0x28   :  { %v93_v26 = vadd.f32 %v92_v21, %v91_v18 }
  0x29   :  { %v71_v20 = vrot.slane %v70_v17, 2 }
  0x2a   :  { %v94_v29 = vrot.slane %v93_v26, 2 }
  0x2b   :  { %v72_v22 = vadd.f32 %v71_v20, %v70_v17 }
  0x2c   :  { %v95_v31 = vadd.f32 %v94_v29, %v93_v26 }
  0x2d   :  { %v73_v24 = vrot.slane %v72_v22, 1 }
  0x2e   :  { %v96_v35 = vrot.slane %v95_v31, 1 }
  0x2f   :  { %v74_v27 = vadd.f32 %v73_v24, %v72_v22 }
  0x30   :  { %v97_v43 = vadd.f32 %v96_v35, %v95_v31 }
  0x31   :  { %182 = vrcp.f32 %v74_v27  ;;  %v110_v36 = vand.u32 2147483648, %v74_v27  ;;  %vm104_vm2 = vweird.f32 %v74_v27  ;;  %v108_v38 = vand.u32 2147483647, %v74_v27 }
  0x32   :  { %184 = vlog2.f32 %v74_v27 }
  0x33   :  { %v111_v42 = vor.u32 1.1754944e-38, %v110_v36  ;;  %vm109_vm5 = vcmp.eq.f32.partialorder %v108_v38, 8.507059e+37 }
  0x37   :  { %v183_v32 = vpop.eup %182 }
  0x38   :  { %v100_v34 = vmul.f32 %v183_v32, %v74_v27  ;;  %vm105_vm3 = vweird.f32 %v183_v32  ;;  %v185_v41 = vpop.eup %184 }
  0x39   :  { %vm106_vm4 = vmor %vm104_vm2, %vm105_vm3  ;;  %v76_v45 = vmul.f32 0.6931472, %v185_v41 }
  0x3a   :  { %v101_v37 = vsub.f32 1.0, %v100_v34 }
  0x3b   :  { %v77_v50 = vadd.f32 %v76_v45, %v64_v7 }
  0x3c   :  { %v102_v40 = vmul.f32 %v183_v32, %v101_v37 }
  0x3d   :  { %v98_v55 = vsub.f32 %v77_v50, %v89_v51 }
  0x3e   :  { %v103_v44 = vadd.f32 %v183_v32, %v102_v40 }
  0x40   :  { %v107_v47 = vsel %vm106_vm4, %v183_v32, %v103_v44 }
  0x41   :  { %v112_v48 = vsel %vm109_vm5, %v111_v42, %v107_v47 }
  0x42   :  { %v113_v49 = vmul.f32 %v112_v48, %v97_v43 }
  0x44   :  { %v114_v52 = vsub.f32 1.0, %v113_v49 }
  0x46   :  { %v115_v53 = vmax.f32 %v114_v52, 0.0 }
  0x48   :  { %v116_v56 = vmin.f32 %v115_v53, 1.0 }
  0x4a   :  { %v117_v57 = vmul.f32 %v116_v56, %v116_v56 }
  0x4c   :  { %v118_v58 = vmul.f32 %v117_v57, %v98_v55 }
  0x4e   :  { %v126_v60 = vsel %vm125_vm6, %v118_v58, 0.0 }
  0x4f   :  { %v133_v61 = vadd.f32 %v132_v59, %v126_v60 }
  0x51   :  { %134 = vst [vmem:[#allocation2] sm:$0x1] %v133_v61 }
  0x58   :  { %v138_v62 = vld [vmem:[#allocation2] sm:$0x1] }
  0x59   :  { %v140_v63 = vsel %vm139_vm7, %v138_v62, 0.0 }
  0x5a   :  { %141 = vadd.xlane.f32.xlu0 %v140_v63 }
  0xcd   :  { %v142_v0 = vpop.xlane.xlu0 %141 }
  0xce   :  { %v143_v1 = vrot.slane %v142_v0, 4 }
  0xd0   :  { %v144_v2 = vadd.f32 %v143_v1, %v142_v0 }
  0xd2   :  { %v145_v3 = vrot.slane %v144_v2, 2 }
  0xd4   :  { %v146_v4 = vadd.f32 %v145_v3, %v144_v2 }
  0xd6   :  { %v147_v5 = vrot.slane %v146_v4, 1 }
  0xd8   :  { %v148_v6 = vadd.f32 %v147_v5, %v146_v4 }
  0xda   :  { %173 = vpush %v148_v6 }
 0x10b   :  { %s174_s22 = spop %173 }
 0x10c   :  { %v150_v7 = vstv %s174_s22 }
 0x10d   :  { %151 = vst [vmem:[#allocation8] sm:$0x1] %v150_v7 }
 0x10e   :  { %162 = dma.vmem_to_hbm [thread:$0]  %s158_s1, 16, %s160_s21, [#allocation5]  }
 0x10f   :  { %262 = dma.done.wait [#allocation5], 16  }
 0x110   :  { %263 = vsyncadd [#allocation5], 4294967280 }
 0x111   :  { %167 = vsyncpa [#allocation4], 1 }
 0x112   :  { %168 = vsyncpa [#allocation7], 1 }
 0x113   :  { %169 = vsyncpa [#allocation5], 1 }

</bundles_post_ra>
